<compile_context>
chip_gen: v7x
topology: tpu7x:2x2x1
jax: 0.10.0
libtpu: 0.0.40
codegen_flags: <defaults>
</compile_context>

<pallas_src>
import functools
import math

import jax
import jax.numpy as jnp
from jax.experimental import pallas as pl
from jax.experimental.pallas import tpu as pltpu


# ---------------------------------------------------------------------------
# helpers
# ---------------------------------------------------------------------------
_VMEM_LIMIT = 48 * 1024 * 1024  # safe on v5e/v6e (128 MiB phys) and v7x (64 MiB phys)


def _pick_tile(dim, target, align):
    """Largest divisor of `dim` that is <= target and a multiple of `align`.
    Falls back to the full dim (always a legal Pallas block)."""
    if dim <= target:
        return dim
    t = (target // align) * align
    while t >= align:
        if dim % t == 0:
            return t
        t -= align
    # TODO(synk): pad awkward dims (e.g. vocab=30522) instead of a full-dim fallback.
    return dim


# ---------------------------------------------------------------------------
# Tiled linear: y = act(x @ w + b) [+ residual], bf16 MXU, f32 accumulate
# ---------------------------------------------------------------------------
def _linear_kernel_acc(x_ref, w_ref, b_ref, *rest, activation, has_residual):
    """Multi-K-tile variant: f32 accumulator in VMEM scratch, epilogue on last k."""
    if has_residual:
        res_ref, o_ref, acc_ref = rest
    else:
        res_ref = None
        o_ref, acc_ref = rest

    k = pl.program_id(2)

    @pl.when(k == 0)
    def _():
        acc_ref[...] = jnp.zeros_like(acc_ref)

    acc_ref[...] += jnp.dot(x_ref[...], w_ref[...],
                            preferred_element_type=jnp.float32)

    @pl.when(k == pl.num_programs(2) - 1)
    def _():
        y = acc_ref[...] + b_ref[...].astype(jnp.float32)
        if activation == "relu":
            y = jnp.maximum(y, 0.0)
        if has_residual:
            y = y + res_ref[...].astype(jnp.float32)
        o_ref[...] = y.astype(o_ref.dtype)


def _linear_kernel_onek(x_ref, w_ref, b_ref, *rest, activation, has_residual):
    """Single-K-tile variant: no scratch accumulator, single fused pass."""
    if has_residual:
        res_ref, o_ref = rest
    else:
        res_ref = None
        (o_ref,) = rest
    y = jnp.dot(x_ref[...], w_ref[...], preferred_element_type=jnp.float32)
    y = y + b_ref[...].astype(jnp.float32)
    if activation == "relu":
        y = jnp.maximum(y, 0.0)
    if has_residual:
        y = y + res_ref[...].astype(jnp.float32)
    o_ref[...] = y.astype(o_ref.dtype)


def linear(x, w, b, *, activation=None, residual=None, out_dtype=None,
           tm_target=256, tn_target=256, tk_target=512):
    """x: (M, K), w: (K, N), b: (N,) [, residual: (M, N)] -> (M, N)."""
    M, K = x.shape
    _, N = w.shape
    out_dtype = out_dtype if out_dtype is not None else x.dtype

    tm = _pick_tile(M, tm_target, 8)
    tn = _pick_tile(N, tn_target, 128)
    tk = _pick_tile(K, tk_target, 128)
    nk = K // tk

    args = [x.astype(jnp.bfloat16), w.astype(jnp.bfloat16),
            b.reshape(1, N).astype(jnp.float32)]
    has_residual = residual is not None
    if has_residual:
        args.append(residual)

    if nk == 1:
        # Single-pass kernel: whole K in one block, no accumulator scratch.
        grid = (M // tm, N // tn)
        in_specs = [
            pl.BlockSpec((tm, K), lambda i, j: (i, 0)),
            pl.BlockSpec((K, tn), lambda i, j: (0, j)),
            pl.BlockSpec((1, tn), lambda i, j: (0, j)),
        ]
        if has_residual:
            in_specs.append(pl.BlockSpec((tm, tn), lambda i, j: (i, j)))
        return pl.pallas_call(
            functools.partial(_linear_kernel_onek, activation=activation,
                              has_residual=has_residual),
            grid=grid,
            in_specs=in_specs,
            out_specs=pl.BlockSpec((tm, tn), lambda i, j: (i, j)),
            out_shape=jax.ShapeDtypeStruct((M, N), out_dtype),
            compiler_params=pltpu.CompilerParams(
                dimension_semantics=("parallel", "parallel"),
                vmem_limit_bytes=_VMEM_LIMIT),
        )(*args)

    grid = (M // tm, N // tn, nk)
    in_specs = [
        pl.BlockSpec((tm, tk), lambda i, j, k: (i, k)),
        pl.BlockSpec((tk, tn), lambda i, j, k: (k, j)),
        pl.BlockSpec((1, tn), lambda i, j, k: (0, j)),
    ]
    if has_residual:
        in_specs.append(pl.BlockSpec((tm, tn), lambda i, j, k: (i, j)))

    return pl.pallas_call(
        functools.partial(_linear_kernel_acc, activation=activation,
                          has_residual=has_residual),
        grid=grid,
        in_specs=in_specs,
        out_specs=pl.BlockSpec((tm, tn), lambda i, j, k: (i, j)),
        out_shape=jax.ShapeDtypeStruct((M, N), out_dtype),
        scratch_shapes=[pltpu.VMEM((tm, tn), jnp.float32)],
        compiler_params=pltpu.CompilerParams(
            dimension_semantics=("parallel", "parallel", "arbitrary"),
            vmem_limit_bytes=_VMEM_LIMIT),
    )(*args)


# ---------------------------------------------------------------------------
# Row-tiled LayerNorm
# ---------------------------------------------------------------------------
def _layernorm_kernel(x_ref, g_ref, b_ref, o_ref, *, eps):
    x = x_ref[...].astype(jnp.float32)
    mean = jnp.mean(x, axis=-1, keepdims=True)
    var = jnp.mean(jnp.square(x - mean), axis=-1, keepdims=True)
    y = (x - mean) * jax.lax.rsqrt(var + eps)
    o_ref[...] = (y * g_ref[...] + b_ref[...]).astype(o_ref.dtype)


def layernorm(x, gamma, beta, *, eps=1e-6, tm_target=512):
    """x: (M, D); gamma/beta: (1, D)."""
    M, D = x.shape
    tm = _pick_tile(M, tm_target, 8)
    return pl.pallas_call(
        functools.partial(_layernorm_kernel, eps=eps),
        grid=(M // tm,),
        in_specs=[pl.BlockSpec((tm, D), lambda i: (i, 0)),
                  pl.BlockSpec((1, D), lambda i: (0, 0)),
                  pl.BlockSpec((1, D), lambda i: (0, 0))],
        out_specs=pl.BlockSpec((tm, D), lambda i: (i, 0)),
        out_shape=jax.ShapeDtypeStruct(x.shape, x.dtype),
        compiler_params=pltpu.CompilerParams(
            dimension_semantics=("parallel",),
            vmem_limit_bytes=_VMEM_LIMIT),
    )(x, gamma, beta)


# ---------------------------------------------------------------------------
# Multi-head attention (per batch/head grid step, whole (S,S) scores in VMEM)
# TODO(synk): for S > 512 convert to a KV-tiled flash-style online softmax
#             (v7x 64 MiB VMEM); fine for typical BERT S<=512 and the test S=8.
# ---------------------------------------------------------------------------
def _attn_kernel(q_ref, k_ref, v_ref, bias_ref, o_ref):
    # q already carries the 1/sqrt(Dh) scale (folded into Wq at build time).
    s = jax.lax.dot_general(q_ref[...], k_ref[...],
                            dimension_numbers=(((1,), (1,)), ((), ())),
                            preferred_element_type=jnp.float32)      # (S, S)
    s = s + bias_ref[...]                                            # additive mask
    m = jnp.max(s, axis=-1, keepdims=True)
    p = jnp.exp(s - m)
    inv = pl.reciprocal(jnp.sum(p, axis=-1, keepdims=True), approx=True)
    p = (p * inv).astype(v_ref.dtype)
    o_ref[...] = jnp.dot(p, v_ref[...],
                         preferred_element_type=jnp.float32).astype(o_ref.dtype)


def multi_head_attention(q, k, v, mask_bias):
    """q,k,v: (B, H, S, Dh) bf16; mask_bias: (B, 1, 1, S) f32 -> (B, H, S, Dh)."""
    B, H, S, Dh = q.shape
    qkv_spec = pl.BlockSpec((None, None, S, Dh), lambda b, h: (b, h, 0, 0))
    bias_spec = pl.BlockSpec((None, None, 1, S), lambda b, h: (b, 0, 0, 0))
    return pl.pallas_call(
        _attn_kernel,
        grid=(B, H),
        in_specs=[qkv_spec, qkv_spec, qkv_spec, bias_spec],
        out_specs=pl.BlockSpec((None, None, S, Dh), lambda b, h: (b, h, 0, 0)),
        out_shape=jax.ShapeDtypeStruct((B, H, S, Dh), q.dtype),
        compiler_params=pltpu.CompilerParams(
            dimension_semantics=("parallel", "parallel"),
            vmem_limit_bytes=_VMEM_LIMIT),
    )(q, k, v, mask_bias)


# ---------------------------------------------------------------------------
# Fused MLM head: Linear(D -> V) + log-softmax, vocab-resident output block
# (logits never round-trip through HBM; finalize on the last vocab tile).
# ---------------------------------------------------------------------------
def _mlm_kernel(x_ref, w_ref, b_ref, o_ref, *, tn):
    j = pl.program_id(1)
    logits = jnp.dot(x_ref[...], w_ref[...], preferred_element_type=jnp.float32)
    logits = logits + b_ref[...].astype(jnp.float32)
    o_ref[:, pl.ds(pl.multiple_of(j * tn, tn), tn)] = logits

    @pl.when(j == pl.num_programs(1) - 1)
    def _():
        full = o_ref[...]                                   # (tm, V) f32, resident
        z = full - jnp.max(full, axis=-1, keepdims=True)
        lse = jnp.log(jnp.sum(jnp.exp(z), axis=-1, keepdims=True))
        o_ref[...] = z - lse


def mlm_head(x, w, b, *, tm_target=128, tn_target=512):
    """x: (M, D), w: (D, V), b: (V,) -> log-probs (M, V) f32."""
    M, D = x.shape
    V = w.shape[1]
    tm = _pick_tile(M, tm_target, 8)
    tn = _pick_tile(V, tn_target, 128)
    grid = (M // tm, V // tn)
    return pl.pallas_call(
        functools.partial(_mlm_kernel, tn=tn),
        grid=grid,
        in_specs=[pl.BlockSpec((tm, D), lambda i, j: (i, 0)),
                  pl.BlockSpec((D, tn), lambda i, j: (0, j)),
                  pl.BlockSpec((1, tn), lambda i, j: (0, j))],
        out_specs=pl.BlockSpec((tm, V), lambda i, j: (i, 0)),
        out_shape=jax.ShapeDtypeStruct((M, V), jnp.float32),
        compiler_params=pltpu.CompilerParams(
            dimension_semantics=("parallel", "arbitrary"),
            vmem_limit_bytes=_VMEM_LIMIT),
    )(x.astype(jnp.bfloat16), w.astype(jnp.bfloat16),
      b.reshape(1, V).astype(jnp.float32))


# ---------------------------------------------------------------------------
# Parameter init (deterministic, synthetic).  Matmul weights stored in bf16
# (MXU-native); LayerNorm params, biases and embeddings stay f32.
# ---------------------------------------------------------------------------
def _w(key, shape, scale=0.02):
    return (scale * jax.random.normal(key, shape)).astype(jnp.float32)


def init_params(key, vocab, seq_len, d, n_layers, d_ff, heads):
    keys = iter(jax.random.split(key, 16 + 12 * n_layers))
    attn_scale = 1.0 / math.sqrt(d // heads)
    p = {
        "tok_emb": _w(next(keys), (vocab, d)),
        "pos_emb": _w(next(keys), (seq_len, d)),
        "seg_emb": _w(next(keys), (2, d)),
        "enc_ln_g": jnp.ones((1, d), jnp.float32),
        "enc_ln_b": jnp.zeros((1, d), jnp.float32),
        "mlm_w": _w(next(keys), (d, vocab)).astype(jnp.bfloat16),
        "mlm_b": jnp.zeros((vocab,), jnp.float32),
        "nsp_w": _w(next(keys), (d, 2)),
        "nsp_b": jnp.zeros((2,), jnp.float32),
        "layers": [],
    }
    for _ in range(n_layers):
        wq = _w(next(keys), (d, d)) * attn_scale     # fold 1/sqrt(Dh) into Wq
        wk = _w(next(keys), (d, d))
        wv = _w(next(keys), (d, d))
        lp = {
            "ln1_g": jnp.ones((1, d), jnp.float32),
            "ln1_b": jnp.zeros((1, d), jnp.float32),
            "w_qkv": jnp.concatenate([wq, wk, wv], axis=1).astype(jnp.bfloat16),
            "b_qkv": jnp.zeros((3 * d,), jnp.float32),
            "wo": _w(next(keys), (d, d)).astype(jnp.bfloat16),
            "bo": jnp.zeros((d,), jnp.float32),
            "ln2_g": jnp.ones((1, d), jnp.float32),
            "ln2_b": jnp.zeros((1, d), jnp.float32),
            "w1": _w(next(keys), (d, d_ff)).astype(jnp.bfloat16),
            "b1": jnp.zeros((d_ff,), jnp.float32),
            "w2": _w(next(keys), (d_ff, d)).astype(jnp.bfloat16),
            "b2": jnp.zeros((d,), jnp.float32),
        }
        p["layers"].append(lp)
    return p


# ---------------------------------------------------------------------------
# Forward pass
# ---------------------------------------------------------------------------
def encoder_block(x2, mask_bias, p, B, S, heads):
    M, D = x2.shape
    Dh = D // heads

    # --- multi-head self-attention sublayer (pre-norm residual) ---
    h = layernorm(x2, p["ln1_g"], p["ln1_b"])
    qkv = linear(h, p["w_qkv"], p["b_qkv"], out_dtype=jnp.bfloat16)   # (M, 3D) fused QKV
    # TODO(synk): head split/merge stay as XLA transposes; carving (S, Dh) blocks
    #             directly via BlockSpec violates the 128-lane tiling when Dh < 128.
    qkv = qkv.reshape(B, S, 3, heads, Dh).transpose(2, 0, 3, 1, 4)    # (3,B,H,S,Dh)
    ctx = multi_head_attention(qkv[0], qkv[1], qkv[2], mask_bias)     # (B,H,S,Dh) bf16
    ctx = ctx.transpose(0, 2, 1, 3).reshape(M, D)
    x2 = linear(ctx, p["wo"], p["bo"], residual=x2, out_dtype=jnp.float32)

    # --- feed-forward sublayer (pre-norm residual) ---
    h = layernorm(x2, p["ln2_g"], p["ln2_b"])
    ff = linear(h, p["w1"], p["b1"], activation="relu", out_dtype=jnp.bfloat16)
    x2 = linear(ff, p["w2"], p["b2"], residual=x2, out_dtype=jnp.float32)
    return x2


def bert_forward(params, x_ids, attention_mask, segment_info, heads):
    B, S = x_ids.shape
    D = params["tok_emb"].shape[1]
    V = params["mlm_w"].shape[1]

    # BERTEmbeddings: token + position + segment (gathers are plain-JAX glue).
    tok = jnp.take(params["tok_emb"], x_ids, axis=0)            # (B, S, D)
    pos = params["pos_emb"][:S][None, :, :]                     # (1, S, D)
    seg = jnp.take(params["seg_emb"], segment_info, axis=0)     # (B, S, D)
    h = (tok + pos + seg).reshape(B * S, D)                     # dropout = identity (eval)

    # additive mask bias computed once (1 = attend -> 0, 0 = padding -> -1e9)
    mask_bias = (1.0 - attention_mask.astype(jnp.float32)) * jnp.float32(-1e9)

    # Encoder stack + final LayerNorm.
    for lp in params["layers"]:
        h = encoder_block(h, mask_bias, lp, B, S, heads)
    h = layernorm(h, params["enc_ln_g"], params["enc_ln_b"])

    # MLM head: fused Linear(D->V) + per-token log-softmax.
    mlm = mlm_head(h, params["mlm_w"], params["mlm_b"]).reshape(B, S, V)

    # NSP head: [CLS] -> 2-way log-softmax.  2-wide output = fully lane-masked
    # stores on TPU, so this stays in plain jnp.
    cls = h.reshape(B, S, D)[:, 0, :]                           # (B, D)
    nsp = jax.nn.log_softmax(cls @ params["nsp_w"] + params["nsp_b"], axis=-1)
    return mlm, nsp


# ---------------------------------------------------------------------------
if __name__ == "__main__":
    VOCAB, SEQ, EMBED, HEADS, LAYERS, DFF = 128, 8, 32, 2, 2, 64
    B = 2

    key = jax.random.PRNGKey(0)
    k_par, k_ids, k_seg = jax.random.split(key, 3)

    params = init_params(k_par, VOCAB, SEQ, EMBED, LAYERS, DFF, HEADS)

    x_ids = jax.random.randint(k_ids, (B, SEQ), 0, VOCAB, dtype=jnp.int32)
    segment_info = jax.random.randint(k_seg, (B, SEQ), 0, 2, dtype=jnp.int32)
    # attention mask: 1 = attend, 0 = padding; mask out the last two tokens of batch 1.
    attention_mask = jnp.ones((B, 1, 1, SEQ), jnp.int32)
    attention_mask = attention_mask.at[1, 0, 0, -2:].set(0)

    fwd = jax.jit(functools.partial(bert_forward, heads=HEADS))
    mlm_out, nsp_out = fwd(params, x_ids, attention_mask, segment_info)
    mlm_out = jax.block_until_ready(mlm_out)
    nsp_out = jax.block_until_ready(nsp_out)

    assert mlm_out.shape == (B, SEQ, VOCAB)
    assert nsp_out.shape == (B, 2)
    assert bool(jnp.all(jnp.isfinite(mlm_out))) and bool(jnp.all(jnp.isfinite(nsp_out)))
    print("KERNEL_OK")
</pallas_src>

<mosaic_0001>
module attributes {stable_mosaic.version = 11 : i64} {
  func.func @_linear_kernel_onek(%arg0: i32, %arg1: i32, %arg2: memref<16x32xbf16, #tpu.memory_space<vmem>>, %arg3: memref<32x96xbf16, #tpu.memory_space<vmem>>, %arg4: memref<1x96xf32, #tpu.memory_space<vmem>>, %arg5: memref<16x96xbf16, #tpu.memory_space<vmem>>) attributes {dimension_semantics = [#tpu.dimension_semantics<parallel>, #tpu.dimension_semantics<parallel>], iteration_bounds = array<i64: 1, 1>, scalar_prefetch = 0 : i64, scratch_operands = 0 : i64, tpu.core_type = #tpu.core_type<tc>, window_params = [{transform_indices = @transform_0, window_bounds = array<i64: 16, 32>}, {transform_indices = @transform_1, window_bounds = array<i64: 32, 96>}, {transform_indices = @transform_2, window_bounds = array<i64: 1, 96>}, {transform_indices = @transform_3, window_bounds = array<i64: 16, 96>}]} {
    %c0 = arith.constant 0 : index
    %c0_0 = arith.constant 0 : index
    %0 = vector.load %arg2[%c0, %c0_0] : memref<16x32xbf16, #tpu.memory_space<vmem>>, vector<16x32xbf16>
    %c0_1 = arith.constant 0 : index
    %c0_2 = arith.constant 0 : index
    %1 = vector.load %arg3[%c0_1, %c0_2] : memref<32x96xbf16, #tpu.memory_space<vmem>>, vector<32x96xbf16>
    %cst = arith.constant dense<0.000000e+00> : vector<16x96xf32>
    %2 = tpu.matmul %0, %1, %cst {dimension_numbers = #tpu.dot_dimension_numbers<[1], [0], [0], [1], [0, 0, 1, 1], [], []>} : vector<16x32xbf16>, vector<32x96xbf16>, vector<16x96xf32> -> vector<16x96xf32>
    %c0_3 = arith.constant 0 : index
    %c0_4 = arith.constant 0 : index
    %3 = vector.load %arg4[%c0_3, %c0_4] : memref<1x96xf32, #tpu.memory_space<vmem>>, vector<1x96xf32>
    %4 = vector.broadcast %3 : vector<1x96xf32> to vector<16x96xf32>
    %5 = arith.addf %2, %4 : vector<16x96xf32>
    %6 = arith.truncf %5 : vector<16x96xf32> to vector<16x96xbf16>
    %c0_5 = arith.constant 0 : index
    %c0_6 = arith.constant 0 : index
    %7 = vector.load %arg5[%c0_5, %c0_6] : memref<16x96xbf16, #tpu.memory_space<vmem>>, vector<16x96xbf16>
    tpu.vector_store %arg5[%c0_5, %c0_6], %6 {strides = array<i32>} : memref<16x96xbf16, #tpu.memory_space<vmem>>, vector<16x96xbf16>,
    return
  }
  func.func @transform_0(%arg0: i32, %arg1: i32) -> (i32, i32) {
    %c0_i32 = arith.constant 0 : i32
    %c0_i32_0 = arith.constant 0 : i32
    return %arg0, %c0_i32 : i32, i32
  }
  func.func @transform_1(%arg0: i32, %arg1: i32) -> (i32, i32) {
    %c0_i32 = arith.constant 0 : i32
    %c0_i32_0 = arith.constant 0 : i32
    return %c0_i32, %arg1 : i32, i32
  }
  func.func @transform_2(%arg0: i32, %arg1: i32) -> (i32, i32) {
    %c0_i32 = arith.constant 0 : i32
    %c0_i32_0 = arith.constant 0 : i32
    return %c0_i32, %arg1 : i32, i32
  }
  func.func @transform_3(%arg0: i32, %arg1: i32) -> (i32, i32) {
    %c0_i32 = arith.constant 0 : i32
    return %arg0, %arg1 : i32, i32
  }
}

module attributes {stable_mosaic.version = 11 : i64} {
  func.func @_layernorm_kernel(%arg0: i32, %arg1: memref<16x32xf32, #tpu.memory_space<vmem>>, %arg2: memref<1x32xf32, #tpu.memory_space<vmem>>, %arg3: memref<1x32xf32, #tpu.memory_space<vmem>>, %arg4: memref<16x32xf32, #tpu.memory_space<vmem>>) attributes {dimension_semantics = [#tpu.dimension_semantics<parallel>], iteration_bounds = array<i64: 1>, scalar_prefetch = 0 : i64, scratch_operands = 0 : i64, tpu.core_type = #tpu.core_type<tc>, window_params = [{transform_indices = @transform_0, window_bounds = array<i64: 16, 32>}, {pipeline_mode = #tpu.pipeline_mode<synchronous>, transform_indices = @transform_1, window_bounds = array<i64: 1, 32>}, {pipeline_mode = #tpu.pipeline_mode<synchronous>, transform_indices = @transform_2, window_bounds = array<i64: 1, 32>}, {transform_indices = @transform_3, window_bounds = array<i64: 16, 32>}]} {
    %c0 = arith.constant 0 : index
    %c0_0 = arith.constant 0 : index
    %0 = vector.load %arg1[%c0, %c0_0] : memref<16x32xf32, #tpu.memory_space<vmem>>, vector<16x32xf32>
    %cst = arith.constant dense<0.000000e+00> : vector<16xf32>
    %1 = vector.multi_reduction <add>, %0, %cst [1] : vector<16x32xf32> to vector<16xf32>
    %2 = vector.shape_cast %1 : vector<16xf32> to vector<16x1xf32>
    %cst_1 = arith.constant 3.200000e+01 : f32
    %3 = vector.broadcast %cst_1 : f32 to vector<16x1xf32>
    %4 = arith.divf %2, %3 : vector<16x1xf32>
    %5 = vector.broadcast %4 : vector<16x1xf32> to vector<16x32xf32>
    %6 = arith.subf %0, %5 : vector<16x32xf32>
    %7 = arith.mulf %6, %6 : vector<16x32xf32>
    %cst_2 = arith.constant dense<0.000000e+00> : vector<16xf32>
    %8 = vector.multi_reduction <add>, %7, %cst_2 [1] : vector<16x32xf32> to vector<16xf32>
    %9 = vector.shape_cast %8 : vector<16xf32> to vector<16x1xf32>
    %cst_3 = arith.constant 3.200000e+01 : f32
    %10 = vector.broadcast %cst_3 : f32 to vector<16x1xf32>
    %11 = arith.divf %9, %10 : vector<16x1xf32>
    %12 = vector.broadcast %4 : vector<16x1xf32> to vector<16x32xf32>
    %13 = arith.subf %0, %12 : vector<16x32xf32>
    %cst_4 = arith.constant 9.99999997E-7 : f32
    %14 = vector.broadcast %cst_4 : f32 to vector<16x1xf32>
    %15 = arith.addf %11, %14 : vector<16x1xf32>
    %16 = math.rsqrt %15 : vector<16x1xf32>
    %17 = vector.broadcast %16 : vector<16x1xf32> to vector<16x32xf32>
    %18 = arith.mulf %13, %17 : vector<16x32xf32>
    %c0_5 = arith.constant 0 : index
    %c0_6 = arith.constant 0 : index
    %19 = vector.load %arg2[%c0_5, %c0_6] : memref<1x32xf32, #tpu.memory_space<vmem>>, vector<1x32xf32>
    %20 = vector.broadcast %19 : vector<1x32xf32> to vector<16x32xf32>
    %21 = arith.mulf %18, %20 : vector<16x32xf32>
    %c0_7 = arith.constant 0 : index
    %c0_8 = arith.constant 0 : index
    %22 = vector.load %arg3[%c0_7, %c0_8] : memref<1x32xf32, #tpu.memory_space<vmem>>, vector<1x32xf32>
    %23 = vector.broadcast %22 : vector<1x32xf32> to vector<16x32xf32>
    %24 = arith.addf %21, %23 : vector<16x32xf32>
    %c0_9 = arith.constant 0 : index
    %c0_10 = arith.constant 0 : index
    %25 = vector.load %arg4[%c0_9, %c0_10] : memref<16x32xf32, #tpu.memory_space<vmem>>, vector<16x32xf32>
    tpu.vector_store %arg4[%c0_9, %c0_10], %24 {strides = array<i32>} : memref<16x32xf32, #tpu.memory_space<vmem>>, vector<16x32xf32>,
    return
  }
  func.func @transform_0(%arg0: i32) -> (i32, i32) {
    %c0_i32 = arith.constant 0 : i32
    %c0_i32_0 = arith.constant 0 : i32
    return %arg0, %c0_i32 : i32, i32
  }
  func.func @transform_1(%arg0: i32) -> (i32, i32) {
    %c0_i32 = arith.constant 0 : i32
    %c0_i32_0 = arith.constant 0 : i32
    %c0_i32_1 = arith.constant 0 : i32
    return %c0_i32, %c0_i32_0 : i32, i32
  }
  func.func @transform_2(%arg0: i32) -> (i32, i32) {
    %c0_i32 = arith.constant 0 : i32
    %c0_i32_0 = arith.constant 0 : i32
    %c0_i32_1 = arith.constant 0 : i32
    return %c0_i32, %c0_i32_0 : i32, i32
  }
  func.func @transform_3(%arg0: i32) -> (i32, i32) {
    %c0_i32 = arith.constant 0 : i32
    %c0_i32_0 = arith.constant 0 : i32
    return %arg0, %c0_i32 : i32, i32
  }
}

module attributes {stable_mosaic.version = 11 : i64} {
  func.func @_attn_kernel(%arg0: i32, %arg1: i32, %arg2: memref<1x1x8x16xbf16, #tpu.memory_space<vmem>>, %arg3: memref<1x1x8x16xbf16, #tpu.memory_space<vmem>>, %arg4: memref<1x1x8x16xbf16, #tpu.memory_space<vmem>>, %arg5: memref<1x1x1x8xf32, #tpu.memory_space<vmem>>, %arg6: memref<1x1x8x16xbf16, #tpu.memory_space<vmem>>) attributes {dimension_semantics = [#tpu.dimension_semantics<parallel>, #tpu.dimension_semantics<parallel>], iteration_bounds = array<i64: 2, 2>, scalar_prefetch = 0 : i64, scratch_operands = 0 : i64, tpu.core_type = #tpu.core_type<tc>, window_params = [{transform_indices = @transform_0, window_bounds = array<i64: 1, 1, 8, 16>}, {transform_indices = @transform_1, window_bounds = array<i64: 1, 1, 8, 16>}, {transform_indices = @transform_2, window_bounds = array<i64: 1, 1, 8, 16>}, {transform_indices = @transform_3, window_bounds = array<i64: 1, 1, 1, 8>}, {transform_indices = @transform_4, window_bounds = array<i64: 1, 1, 8, 16>}]} {
    %c0 = arith.constant 0 : index
    %c0_0 = arith.constant 0 : index
    %c0_1 = arith.constant 0 : index
    %c0_2 = arith.constant 0 : index
    %0 = vector.load %arg2[%c0, %c0_0, %c0_1, %c0_2] : memref<1x1x8x16xbf16, #tpu.memory_space<vmem>>, vector<1x1x8x16xbf16>
    %1 = vector.shape_cast %0 : vector<1x1x8x16xbf16> to vector<8x16xbf16>
    %c0_3 = arith.constant 0 : index
    %c0_4 = arith.constant 0 : index
    %c0_5 = arith.constant 0 : index
    %c0_6 = arith.constant 0 : index
    %2 = vector.load %arg3[%c0_3, %c0_4, %c0_5, %c0_6] : memref<1x1x8x16xbf16, #tpu.memory_space<vmem>>, vector<1x1x8x16xbf16>
    %3 = vector.shape_cast %2 : vector<1x1x8x16xbf16> to vector<8x16xbf16>
    %cst = arith.constant dense<0.000000e+00> : vector<8x8xf32>
    %4 = tpu.matmul %1, %3, %cst {dimension_numbers = #tpu.dot_dimension_numbers<[1], [1], [0], [0], [0, 0, 1, 0], [], []>} : vector<8x16xbf16>, vector<8x16xbf16>, vector<8x8xf32> -> vector<8x8xf32>
    %c0_7 = arith.constant 0 : index
    %c0_8 = arith.constant 0 : index
    %c0_9 = arith.constant 0 : index
    %c0_10 = arith.constant 0 : index
    %5 = vector.load %arg5[%c0_7, %c0_8, %c0_9, %c0_10] : memref<1x1x1x8xf32, #tpu.memory_space<vmem>>, vector<1x1x1x8xf32>
    %6 = vector.shape_cast %5 : vector<1x1x1x8xf32> to vector<1x8xf32>
    %7 = vector.broadcast %6 : vector<1x8xf32> to vector<8x8xf32>
    %8 = arith.addf %4, %7 : vector<8x8xf32>
    %cst_11 = arith.constant dense<0xFF800000> : vector<8xf32>
    %9 = vector.multi_reduction <maximumf>, %8, %cst_11 [1] : vector<8x8xf32> to vector<8xf32>
    %10 = vector.shape_cast %9 : vector<8xf32> to vector<8x1xf32>
    %11 = vector.broadcast %10 : vector<8x1xf32> to vector<8x8xf32>
    %12 = arith.subf %8, %11 : vector<8x8xf32>
    %13 = math.exp %12 : vector<8x8xf32>
    %cst_12 = arith.constant dense<0.000000e+00> : vector<8xf32>
    %14 = vector.multi_reduction <add>, %13, %cst_12 [1] : vector<8x8xf32> to vector<8xf32>
    %15 = vector.shape_cast %14 : vector<8xf32> to vector<8x1xf32>
    %16 = tpu.reciprocal %15 {approx = true} : vector<8x1xf32> -> vector<8x1xf32>
    %17 = vector.broadcast %16 : vector<8x1xf32> to vector<8x8xf32>
    %18 = arith.mulf %13, %17 : vector<8x8xf32>
    %19 = arith.truncf %18 : vector<8x8xf32> to vector<8x8xbf16>
    %c0_13 = arith.constant 0 : index
    %c0_14 = arith.constant 0 : index
    %c0_15 = arith.constant 0 : index
    %c0_16 = arith.constant 0 : index
    %20 = vector.load %arg4[%c0_13, %c0_14, %c0_15, %c0_16] : memref<1x1x8x16xbf16, #tpu.memory_space<vmem>>, vector<1x1x8x16xbf16>
    %21 = vector.shape_cast %20 : vector<1x1x8x16xbf16> to vector<8x16xbf16>
    %cst_17 = arith.constant dense<0.000000e+00> : vector<8x16xf32>
    %22 = tpu.matmul %19, %21, %cst_17 {dimension_numbers = #tpu.dot_dimension_numbers<[1], [0], [0], [1], [0, 0, 1, 1], [], []>} : vector<8x8xbf16>, vector<8x16xbf16>, vector<8x16xf32> -> vector<8x16xf32>
    %23 = arith.truncf %22 : vector<8x16xf32> to vector<8x16xbf16>
    %c0_18 = arith.constant 0 : index
    %c0_19 = arith.constant 0 : index
    %c0_20 = arith.constant 0 : index
    %c0_21 = arith.constant 0 : index
    %24 = vector.load %arg6[%c0_18, %c0_19, %c0_20, %c0_21] : memref<1x1x8x16xbf16, #tpu.memory_space<vmem>>, vector<1x1x8x16xbf16>
    %25 = vector.shape_cast %24 : vector<1x1x8x16xbf16> to vector<8x16xbf16>
    %26 = vector.shape_cast %23 : vector<8x16xbf16> to vector<1x1x8x16xbf16>
    tpu.vector_store %arg6[%c0_18, %c0_19, %c0_20, %c0_21], %26 {strides = array<i32>} : memref<1x1x8x16xbf16, #tpu.memory_space<vmem>>, vector<1x1x8x16xbf16>,
    return
  }
  func.func @transform_0(%arg0: i32, %arg1: i32) -> (i32, i32, i32, i32) {
    %c0_i32 = arith.constant 0 : i32
    %c0_i32_0 = arith.constant 0 : i32
    %c0_i32_1 = arith.constant 0 : i32
    return %arg0, %arg1, %c0_i32, %c0_i32_0 : i32, i32, i32, i32
  }
  func.func @transform_1(%arg0: i32, %arg1: i32) -> (i32, i32, i32, i32) {
    %c0_i32 = arith.constant 0 : i32
    %c0_i32_0 = arith.constant 0 : i32
    %c0_i32_1 = arith.constant 0 : i32
    return %arg0, %arg1, %c0_i32, %c0_i32_0 : i32, i32, i32, i32
  }
  func.func @transform_2(%arg0: i32, %arg1: i32) -> (i32, i32, i32, i32) {
    %c0_i32 = arith.constant 0 : i32
    %c0_i32_0 = arith.constant 0 : i32
    %c0_i32_1 = arith.constant 0 : i32
    return %arg0, %arg1, %c0_i32, %c0_i32_0 : i32, i32, i32, i32
  }
  func.func @transform_3(%arg0: i32, %arg1: i32) -> (i32, i32, i32, i32) {
    %c0_i32 = arith.constant 0 : i32
    %c0_i32_0 = arith.constant 0 : i32
    %c0_i32_1 = arith.constant 0 : i32
    %c0_i32_2 = arith.constant 0 : i32
    return %arg0, %c0_i32, %c0_i32_0, %c0_i32_1 : i32, i32, i32, i32
  }
  func.func @transform_4(%arg0: i32, %arg1: i32) -> (i32, i32, i32, i32) {
    %c0_i32 = arith.constant 0 : i32
    %c0_i32_0 = arith.constant 0 : i32
    %c0_i32_1 = arith.constant 0 : i32
    return %arg0, %arg1, %c0_i32, %c0_i32_0 : i32, i32, i32, i32
  }
}

module attributes {stable_mosaic.version = 11 : i64} {
  func.func @_linear_kernel_onek(%arg0: i32, %arg1: i32, %arg2: memref<16x32xbf16, #tpu.memory_space<vmem>>, %arg3: memref<32x32xbf16, #tpu.memory_space<vmem>>, %arg4: memref<1x32xf32, #tpu.memory_space<vmem>>, %arg5: memref<16x32xf32, #tpu.memory_space<vmem>>, %arg6: memref<16x32xf32, #tpu.memory_space<vmem>>) attributes {dimension_semantics = [#tpu.dimension_semantics<parallel>, #tpu.dimension_semantics<parallel>], iteration_bounds = array<i64: 1, 1>, scalar_prefetch = 0 : i64, scratch_operands = 0 : i64, tpu.core_type = #tpu.core_type<tc>, window_params = [{transform_indices = @transform_0, window_bounds = array<i64: 16, 32>}, {transform_indices = @transform_1, window_bounds = array<i64: 32, 32>}, {transform_indices = @transform_2, window_bounds = array<i64: 1, 32>}, {transform_indices = @transform_3, window_bounds = array<i64: 16, 32>}, {transform_indices = @transform_4, window_bounds = array<i64: 16, 32>}]} {
    %c0 = arith.constant 0 : index
    %c0_0 = arith.constant 0 : index
    %0 = vector.load %arg2[%c0, %c0_0] : memref<16x32xbf16, #tpu.memory_space<vmem>>, vector<16x32xbf16>
    %c0_1 = arith.constant 0 : index
    %c0_2 = arith.constant 0 : index
    %1 = vector.load %arg3[%c0_1, %c0_2] : memref<32x32xbf16, #tpu.memory_space<vmem>>, vector<32x32xbf16>
    %cst = arith.constant dense<0.000000e+00> : vector<16x32xf32>
    %2 = tpu.matmul %0, %1, %cst {dimension_numbers = #tpu.dot_dimension_numbers<[1], [0], [0], [1], [0, 0, 1, 1], [], []>} : vector<16x32xbf16>, vector<32x32xbf16>, vector<16x32xf32> -> vector<16x32xf32>
    %c0_3 = arith.constant 0 : index
    %c0_4 = arith.constant 0 : index
    %3 = vector.load %arg4[%c0_3, %c0_4] : memref<1x32xf32, #tpu.memory_space<vmem>>, vector<1x32xf32>
    %4 = vector.broadcast %3 : vector<1x32xf32> to vector<16x32xf32>
    %5 = arith.addf %2, %4 : vector<16x32xf32>
    %c0_5 = arith.constant 0 : index
    %c0_6 = arith.constant 0 : index
    %6 = vector.load %arg5[%c0_5, %c0_6] : memref<16x32xf32, #tpu.memory_space<vmem>>, vector<16x32xf32>
    %7 = arith.addf %5, %6 : vector<16x32xf32>
    %c0_7 = arith.constant 0 : index
    %c0_8 = arith.constant 0 : index
    %8 = vector.load %arg6[%c0_7, %c0_8] : memref<16x32xf32, #tpu.memory_space<vmem>>, vector<16x32xf32>
    tpu.vector_store %arg6[%c0_7, %c0_8], %7 {strides = array<i32>} : memref<16x32xf32, #tpu.memory_space<vmem>>, vector<16x32xf32>,
    return
  }
  func.func @transform_0(%arg0: i32, %arg1: i32) -> (i32, i32) {
    %c0_i32 = arith.constant 0 : i32
    %c0_i32_0 = arith.constant 0 : i32
    return %arg0, %c0_i32 : i32, i32
  }
  func.func @transform_1(%arg0: i32, %arg1: i32) -> (i32, i32) {
    %c0_i32 = arith.constant 0 : i32
    %c0_i32_0 = arith.constant 0 : i32
    return %c0_i32, %arg1 : i32, i32
  }
  func.func @transform_2(%arg0: i32, %arg1: i32) -> (i32, i32) {
    %c0_i32 = arith.constant 0 : i32
    %c0_i32_0 = arith.constant 0 : i32
    return %c0_i32, %arg1 : i32, i32
  }
  func.func @transform_3(%arg0: i32, %arg1: i32) -> (i32, i32) {
    %c0_i32 = arith.constant 0 : i32
    return %arg0, %arg1 : i32, i32
  }
  func.func @transform_4(%arg0: i32, %arg1: i32) -> (i32, i32) {
    %c0_i32 = arith.constant 0 : i32
    return %arg0, %arg1 : i32, i32
  }
}

module attributes {stable_mosaic.version = 11 : i64} {
  func.func @_linear_kernel_onek(%arg0: i32, %arg1: i32, %arg2: memref<16x32xbf16, #tpu.memory_space<vmem>>, %arg3: memref<32x64xbf16, #tpu.memory_space<vmem>>, %arg4: memref<1x64xf32, #tpu.memory_space<vmem>>, %arg5: memref<16x64xbf16, #tpu.memory_space<vmem>>) attributes {dimension_semantics = [#tpu.dimension_semantics<parallel>, #tpu.dimension_semantics<parallel>], iteration_bounds = array<i64: 1, 1>, scalar_prefetch = 0 : i64, scratch_operands = 0 : i64, tpu.core_type = #tpu.core_type<tc>, window_params = [{transform_indices = @transform_0, window_bounds = array<i64: 16, 32>}, {transform_indices = @transform_1, window_bounds = array<i64: 32, 64>}, {transform_indices = @transform_2, window_bounds = array<i64: 1, 64>}, {transform_indices = @transform_3, window_bounds = array<i64: 16, 64>}]} {
    %c0 = arith.constant 0 : index
    %c0_0 = arith.constant 0 : index
    %0 = vector.load %arg2[%c0, %c0_0] : memref<16x32xbf16, #tpu.memory_space<vmem>>, vector<16x32xbf16>
    %c0_1 = arith.constant 0 : index
    %c0_2 = arith.constant 0 : index
    %1 = vector.load %arg3[%c0_1, %c0_2] : memref<32x64xbf16, #tpu.memory_space<vmem>>, vector<32x64xbf16>
    %cst = arith.constant dense<0.000000e+00> : vector<16x64xf32>
    %2 = tpu.matmul %0, %1, %cst {dimension_numbers = #tpu.dot_dimension_numbers<[1], [0], [0], [1], [0, 0, 1, 1], [], []>} : vector<16x32xbf16>, vector<32x64xbf16>, vector<16x64xf32> -> vector<16x64xf32>
    %c0_3 = arith.constant 0 : index
    %c0_4 = arith.constant 0 : index
    %3 = vector.load %arg4[%c0_3, %c0_4] : memref<1x64xf32, #tpu.memory_space<vmem>>, vector<1x64xf32>
    %4 = vector.broadcast %3 : vector<1x64xf32> to vector<16x64xf32>
    %5 = arith.addf %2, %4 : vector<16x64xf32>
    %cst_5 = arith.constant 0.000000e+00 : f32
    %6 = vector.broadcast %cst_5 : f32 to vector<16x64xf32>
    %7 = arith.maximumf %5, %6 : vector<16x64xf32>
    %8 = arith.truncf %7 : vector<16x64xf32> to vector<16x64xbf16>
    %c0_6 = arith.constant 0 : index
    %c0_7 = arith.constant 0 : index
    %9 = vector.load %arg5[%c0_6, %c0_7] : memref<16x64xbf16, #tpu.memory_space<vmem>>, vector<16x64xbf16>
    tpu.vector_store %arg5[%c0_6, %c0_7], %8 {strides = array<i32>} : memref<16x64xbf16, #tpu.memory_space<vmem>>, vector<16x64xbf16>,
    return
  }
  func.func @transform_0(%arg0: i32, %arg1: i32) -> (i32, i32) {
    %c0_i32 = arith.constant 0 : i32
    %c0_i32_0 = arith.constant 0 : i32
    return %arg0, %c0_i32 : i32, i32
  }
  func.func @transform_1(%arg0: i32, %arg1: i32) -> (i32, i32) {
    %c0_i32 = arith.constant 0 : i32
    %c0_i32_0 = arith.constant 0 : i32
    return %c0_i32, %arg1 : i32, i32
  }
  func.func @transform_2(%arg0: i32, %arg1: i32) -> (i32, i32) {
    %c0_i32 = arith.constant 0 : i32
    %c0_i32_0 = arith.constant 0 : i32
    return %c0_i32, %arg1 : i32, i32
  }
  func.func @transform_3(%arg0: i32, %arg1: i32) -> (i32, i32) {
    %c0_i32 = arith.constant 0 : i32
    return %arg0, %arg1 : i32, i32
  }
}

module attributes {stable_mosaic.version = 11 : i64} {
  func.func @_linear_kernel_onek(%arg0: i32, %arg1: i32, %arg2: memref<16x64xbf16, #tpu.memory_space<vmem>>, %arg3: memref<64x32xbf16, #tpu.memory_space<vmem>>, %arg4: memref<1x32xf32, #tpu.memory_space<vmem>>, %arg5: memref<16x32xf32, #tpu.memory_space<vmem>>, %arg6: memref<16x32xf32, #tpu.memory_space<vmem>>) attributes {dimension_semantics = [#tpu.dimension_semantics<parallel>, #tpu.dimension_semantics<parallel>], iteration_bounds = array<i64: 1, 1>, scalar_prefetch = 0 : i64, scratch_operands = 0 : i64, tpu.core_type = #tpu.core_type<tc>, window_params = [{transform_indices = @transform_0, window_bounds = array<i64: 16, 64>}, {transform_indices = @transform_1, window_bounds = array<i64: 64, 32>}, {transform_indices = @transform_2, window_bounds = array<i64: 1, 32>}, {transform_indices = @transform_3, window_bounds = array<i64: 16, 32>}, {transform_indices = @transform_4, window_bounds = array<i64: 16, 32>}]} {
    %c0 = arith.constant 0 : index
    %c0_0 = arith.constant 0 : index
    %0 = vector.load %arg2[%c0, %c0_0] : memref<16x64xbf16, #tpu.memory_space<vmem>>, vector<16x64xbf16>
    %c0_1 = arith.constant 0 : index
    %c0_2 = arith.constant 0 : index
    %1 = vector.load %arg3[%c0_1, %c0_2] : memref<64x32xbf16, #tpu.memory_space<vmem>>, vector<64x32xbf16>
    %cst = arith.constant dense<0.000000e+00> : vector<16x32xf32>
    %2 = tpu.matmul %0, %1, %cst {dimension_numbers = #tpu.dot_dimension_numbers<[1], [0], [0], [1], [0, 0, 1, 1], [], []>} : vector<16x64xbf16>, vector<64x32xbf16>, vector<16x32xf32> -> vector<16x32xf32>
    %c0_3 = arith.constant 0 : index
    %c0_4 = arith.constant 0 : index
    %3 = vector.load %arg4[%c0_3, %c0_4] : memref<1x32xf32, #tpu.memory_space<vmem>>, vector<1x32xf32>
    %4 = vector.broadcast %3 : vector<1x32xf32> to vector<16x32xf32>
    %5 = arith.addf %2, %4 : vector<16x32xf32>
    %c0_5 = arith.constant 0 : index
    %c0_6 = arith.constant 0 : index
    %6 = vector.load %arg5[%c0_5, %c0_6] : memref<16x32xf32, #tpu.memory_space<vmem>>, vector<16x32xf32>
    %7 = arith.addf %5, %6 : vector<16x32xf32>
    %c0_7 = arith.constant 0 : index
    %c0_8 = arith.constant 0 : index
    %8 = vector.load %arg6[%c0_7, %c0_8] : memref<16x32xf32, #tpu.memory_space<vmem>>, vector<16x32xf32>
    tpu.vector_store %arg6[%c0_7, %c0_8], %7 {strides = array<i32>} : memref<16x32xf32, #tpu.memory_space<vmem>>, vector<16x32xf32>,
    return
  }
  func.func @transform_0(%arg0: i32, %arg1: i32) -> (i32, i32) {
    %c0_i32 = arith.constant 0 : i32
    %c0_i32_0 = arith.constant 0 : i32
    return %arg0, %c0_i32 : i32, i32
  }
  func.func @transform_1(%arg0: i32, %arg1: i32) -> (i32, i32) {
    %c0_i32 = arith.constant 0 : i32
    %c0_i32_0 = arith.constant 0 : i32
    return %c0_i32, %arg1 : i32, i32
  }
  func.func @transform_2(%arg0: i32, %arg1: i32) -> (i32, i32) {
    %c0_i32 = arith.constant 0 : i32
    %c0_i32_0 = arith.constant 0 : i32
    return %c0_i32, %arg1 : i32, i32
  }
  func.func @transform_3(%arg0: i32, %arg1: i32) -> (i32, i32) {
    %c0_i32 = arith.constant 0 : i32
    return %arg0, %arg1 : i32, i32
  }
  func.func @transform_4(%arg0: i32, %arg1: i32) -> (i32, i32) {
    %c0_i32 = arith.constant 0 : i32
    return %arg0, %arg1 : i32, i32
  }
}

module attributes {stable_mosaic.version = 11 : i64} {
  func.func @_mlm_kernel(%arg0: i32, %arg1: i32, %arg2: memref<16x32xbf16, #tpu.memory_space<vmem>>, %arg3: memref<32x128xbf16, #tpu.memory_space<vmem>>, %arg4: memref<1x128xf32, #tpu.memory_space<vmem>>, %arg5: memref<16x128xf32, #tpu.memory_space<vmem>>) attributes {dimension_semantics = [#tpu.dimension_semantics<parallel>, #tpu.dimension_semantics<arbitrary>], iteration_bounds = array<i64: 1, 1>, scalar_prefetch = 0 : i64, scratch_operands = 0 : i64, tpu.core_type = #tpu.core_type<tc>, window_params = [{transform_indices = @transform_0, window_bounds = array<i64: 16, 32>}, {transform_indices = @transform_1, window_bounds = array<i64: 32, 128>}, {transform_indices = @transform_2, window_bounds = array<i64: 1, 128>}, {transform_indices = @transform_3, window_bounds = array<i64: 16, 128>}]} {
    %c0 = arith.constant 0 : index
    %c0_0 = arith.constant 0 : index
    %0 = vector.load %arg2[%c0, %c0_0] : memref<16x32xbf16, #tpu.memory_space<vmem>>, vector<16x32xbf16>
    %c0_1 = arith.constant 0 : index
    %c0_2 = arith.constant 0 : index
    %1 = vector.load %arg3[%c0_1, %c0_2] : memref<32x128xbf16, #tpu.memory_space<vmem>>, vector<32x128xbf16>
    %cst = arith.constant dense<0.000000e+00> : vector<16x128xf32>
    %2 = tpu.matmul %0, %1, %cst {dimension_numbers = #tpu.dot_dimension_numbers<[1], [0], [0], [1], [0, 0, 1, 1], [], []>} : vector<16x32xbf16>, vector<32x128xbf16>, vector<16x128xf32> -> vector<16x128xf32>
    %c0_3 = arith.constant 0 : index
    %c0_4 = arith.constant 0 : index
    %3 = vector.load %arg4[%c0_3, %c0_4] : memref<1x128xf32, #tpu.memory_space<vmem>>, vector<1x128xf32>
    %4 = vector.broadcast %3 : vector<1x128xf32> to vector<16x128xf32>
    %5 = arith.addf %2, %4 : vector<16x128xf32>
    %c128_i32 = arith.constant 128 : i32
    %6 = arith.muli %arg1, %c128_i32 : i32
    %7 = tpu.assume_multiple %6, 128 : i32
    %c0_5 = arith.constant 0 : index
    %8 = arith.index_cast %7 : i32 to index
    %9 = vector.load %arg5[%c0_5, %8] : memref<16x128xf32, #tpu.memory_space<vmem>>, vector<16x128xf32>
    tpu.vector_store %arg5[%c0_5, %8], %5 {strides = array<i32>} : memref<16x128xf32, #tpu.memory_space<vmem>>, vector<16x128xf32>,
    %c0_i32 = arith.constant 0 : i32
    %10 = arith.cmpi eq, %arg1, %c0_i32 : i32
    %11 = arith.extui %10 : i1 to i32
    %c0_i32_6 = arith.constant 0 : i32
    %12 = arith.cmpi ne, %11, %c0_i32_6 : i32
    scf.if %12 {
      %c0_7 = arith.constant 0 : index
      %c0_8 = arith.constant 0 : index
      %13 = vector.load %arg5[%c0_7, %c0_8] : memref<16x128xf32, #tpu.memory_space<vmem>>, vector<16x128xf32>
      %cst_9 = arith.constant dense<0xFF800000> : vector<16xf32>
      %14 = vector.multi_reduction <maximumf>, %13, %cst_9 [1] : vector<16x128xf32> to vector<16xf32>
      %15 = vector.shape_cast %14 : vector<16xf32> to vector<16x1xf32>
      %16 = vector.broadcast %15 : vector<16x1xf32> to vector<16x128xf32>
      %17 = arith.subf %13, %16 : vector<16x128xf32>
      %18 = math.exp %17 : vector<16x128xf32>
      %cst_10 = arith.constant dense<0.000000e+00> : vector<16xf32>
      %19 = vector.multi_reduction <add>, %18, %cst_10 [1] : vector<16x128xf32> to vector<16xf32>
      %20 = vector.shape_cast %19 : vector<16xf32> to vector<16x1xf32>
      %21 = math.log %20 : vector<16x1xf32>
      %22 = vector.broadcast %21 : vector<16x1xf32> to vector<16x128xf32>
      %23 = arith.subf %17, %22 : vector<16x128xf32>
      %c0_11 = arith.constant 0 : index
      %c0_12 = arith.constant 0 : index
      %24 = vector.load %arg5[%c0_11, %c0_12] : memref<16x128xf32, #tpu.memory_space<vmem>>, vector<16x128xf32>
      tpu.vector_store %arg5[%c0_11, %c0_12], %23 {strides = array<i32>} : memref<16x128xf32, #tpu.memory_space<vmem>>, vector<16x128xf32>,
    } else {
    }
    return
  }
  func.func @transform_0(%arg0: i32, %arg1: i32) -> (i32, i32) {
    %c0_i32 = arith.constant 0 : i32
    %c0_i32_0 = arith.constant 0 : i32
    return %arg0, %c0_i32 : i32, i32
  }
  func.func @transform_1(%arg0: i32, %arg1: i32) -> (i32, i32) {
    %c0_i32 = arith.constant 0 : i32
    %c0_i32_0 = arith.constant 0 : i32
    return %c0_i32, %arg1 : i32, i32
  }
  func.func @transform_2(%arg0: i32, %arg1: i32) -> (i32, i32) {
    %c0_i32 = arith.constant 0 : i32
    %c0_i32_0 = arith.constant 0 : i32
    return %c0_i32, %arg1 : i32, i32
  }
  func.func @transform_3(%arg0: i32, %arg1: i32) -> (i32, i32) {
    %c0_i32 = arith.constant 0 : i32
    %c0_i32_0 = arith.constant 0 : i32
    return %arg0, %c0_i32 : i32, i32
  }
}

</mosaic_0001>

<bundles_post_ra>
// kernel: bert_forward.17
= control target key start
LH: loop header
LB: loop body
LE: loop exit
PB: predicated region body
PF: predicated region fallthrough
CT: control target
= control target key end

     0   :  { %v130_v0 = vmov 0.0   ;;  %vm131_vm0 = vmmov 0   ;;  %vm45_vm1 = vcmask 261120   ;;  %vm98_vm2 = vcmask 781312   ;;  %s170_s1 = inlined_call_operand.vmem [shape: bf16[32,96], index: 1, kind: input, shape index: {}]   ;;  %s171_s0 = inlined_call_operand.vmem [shape: bf16[16,32], index: 0, kind: input, shape index: {}]   ;;  %s172_s2 = inlined_call_operand.vmem [shape: f32[1,96], index: 2, kind: input, shape index: {}]   ;;  %s173_s3 = inlined_call_operand.vmem [shape: bf16[16,96], index: 3, kind: output, shape index: {}]  }
   0x1   :  { %117 = vmatprep.subr.bf16.mxu0 %v130_v0  ;;  %v127_v1 = vld [vmem:[%s170_s1] sm:$0xff]   ;;  %121 = vmatprep.mubr.msk.bf16.mxu0 %vm131_vm0, %v130_v0  ;;  %v128_v2 = vld [vmem:[%s170_s1 + $0x8] sm:$0xff]  }
   0x2   :  { %118 = vmatpush3.bf16.msra.mxu0 %v127_v1  ;;  %v129_v3 = vld [vmem:[%s171_s0] sm:$0xff]  }
   0x3   :  { %119 = vmatprep.subr.bf16.mxu0 %v130_v0  ;;  %v105_v4 = vld [vmem:[%s172_s2] ss:$0 sm:$0xff] }
   0x6   :  { %120 = vmatpush3.bf16.msra.mxu0 %v128_v2 }
   0x9   :  { %122 = vmatmul.mubr.msk.bf16.vlgmr.msra.gmra.mrb[0].mxu0 %vm45_vm1, %v129_v3 }
  0xdc   :  { %v83_v5 = vpop.f32.mrb[0].mxu0 }
  0xdd   :  { %v84_v6 = vadd.f32 %v105_v4, %v83_v5  ;;  %v123_v7 = vpop.f32.mrb[1].mxu0 }
  0xde   :  { %v86_v8 = vpop.f32.mrb[2].mxu0 }
  0xdf   :  { %v112_v9 = vpack.c.bf16 %v84_v6, %v84_v6  ;;  %v87_v10 = vadd.f32 %v105_v4, %v86_v8  ;;  %v124_v11 = vpop.f32.mrb[3].mxu0 }
  0xe1   :  { %99 = vst.msk [vmem:[%s173_s3] sm:$0xf] %vm98_vm2, %v112_v9  ;;  %v113_v12 = vpack.c.bf16 %v87_v10, %v87_v10 }
  0xe3   :  { %100 = vst.msk [vmem:[%s173_s3 + $0x4] sm:$0xf] %vm98_vm2, %v113_v12 }

// kernel: bert_forward.16
= control target key start
LH: loop header
LB: loop body
LE: loop exit
PB: predicated region body
PF: predicated region fallthrough
CT: control target
= control target key end

     0   :  { %vm16_vm0 = vcmask 261120   ;;  %s118_s0 = inlined_call_operand.vmem [shape: f32[16,32], index: 0, kind: input, shape index: {}]   ;;  %s119_s1 = inlined_call_operand.vmem [shape: f32[1,32], index: 1, kind: input, shape index: {}]   ;;  %s120_s2 = inlined_call_operand.vmem [shape: f32[1,32], index: 2, kind: input, shape index: {}]   ;;  %s121_s3 = inlined_call_operand.vmem [shape: f32[16,32], index: 3, kind: output, shape index: {}]  }
   0x1   :  { %v14_v0 = vld [vmem:[%s118_s0] sm:$0xff]  ;;  %v15_v1 = vld [vmem:[%s118_s0 + $0x8] sm:$0xff] }
   0x2   :  { %v17_v2 = vsel %vm16_vm0, %v14_v0, 0.0  ;;  %v20_v3 = vsel %vm16_vm0, %v15_v1, 0.0  ;;  %v68_v21 = vld [vmem:[%s119_s1] ss:$0 sm:$0xff] }
   0x3   :  { %18 = vadd.xlane.f32.xlu0 %v17_v2  ;;  %v69_v23 = vld [vmem:[%s120_s2] ss:$0 sm:$0xff] }
   0x7   :  { %21 = vadd.xlane.f32.xlu0 %v20_v3 }
  0x90   :  { %v19_v4 = vpop.xlane.xlu0 %18 }
  0x91   :  { %v24_v5 = vmul.f32 0.03125, %v19_v4 }
  0x93   :  { %v26_v6 = vsub.f32 %v14_v0, %v24_v5 }
  0x94   :  { %v22_v7 = vpop.xlane.xlu0 %21 }
  0x95   :  { %v25_v8 = vmul.f32 0.03125, %v22_v7  ;;  %v28_v9 = vmul.f32 %v26_v6, %v26_v6 }
  0x97   :  { %v27_v10 = vsub.f32 %v15_v1, %v25_v8  ;;  %v30_v11 = vsel %vm16_vm0, %v28_v9, 0.0 }
  0x98   :  { %31 = vadd.xlane.f32.xlu1 %v30_v11 }
  0x99   :  { %v29_v12 = vmul.f32 %v27_v10, %v27_v10 }
  0x9b   :  { %v33_v13 = vsel %vm16_vm0, %v29_v12, 0.0 }
  0x9c   :  { %34 = vadd.xlane.f32.xlu1 %v33_v13 }
 0x125   :  { %v32_v14 = vpop.xlane.xlu1 %31 }
 0x126   :  { %v36_v15 = vmul.f32 0.03125, %v32_v14 }
 0x128   :  { %v38_v16 = vadd.f32 1e-06, %v36_v15 }
 0x129   :  { %v35_v17 = vpop.xlane.xlu1 %34 }
 0x12a   :  { %70 = vrsqrt.f32 %v38_v16  ;;  %v37_v18 = vmul.f32 0.03125, %v35_v17 }
 0x12c   :  { %v39_v19 = vadd.f32 1e-06, %v37_v18 }
 0x12e   :  { %72 = vrsqrt.f32 %v39_v19 }
 0x134   :  { %v71_v20 = vpop.eup %70 }
 0x135   :  { %v42_v22 = vmul.f32 %v71_v20, %v26_v6 }
 0x137   :  { %v51_v24 = vmul.f32 %v68_v21, %v42_v22 }
 0x138   :  { %v73_v25 = vpop.eup %72 }
 0x139   :  { %v60_v26 = vadd.f32 %v69_v23, %v51_v24  ;;  %v43_v27 = vmul.f32 %v73_v25, %v27_v10 }
 0x13b   :  { %62 = vst.msk [vmem:[%s121_s3] sm:$0xff] %vm16_vm0, %v60_v26  ;;  %v52_v28 = vmul.f32 %v68_v21, %v43_v27 }
 0x13d   :  { %v61_v29 = vadd.f32 %v69_v23, %v52_v28 }
 0x13f   :  { %63 = vst.msk [vmem:[%s121_s3 + $0x8] sm:$0xff] %vm16_vm0, %v61_v29 }

// kernel: bert_forward.18
= control target key start
LH: loop header
LB: loop body
LE: loop exit
PB: predicated region body
PF: predicated region fallthrough
CT: control target
= control target key end

     0   :  { %s704_s15 = smov 0   ;;  %s706_s16 = smov 0   ;;  %s773_s0 = inlined_call_operand.vmem [shape: bf16[2,2,8,16], index: 0, kind: input, shape index: {}]   ;;  %s774_s1 = inlined_call_operand.vmem [shape: bf16[2,2,8,16], index: 1, kind: input, shape index: {}]   ;;  %s775_s2 = inlined_call_operand.vmem [shape: bf16[2,2,8,16], index: 2, kind: input, shape index: {}]   ;;  %s776_s3 = inlined_call_operand.vmem [shape: f32[2,1,1,8], index: 3, kind: input, shape index: {}]   ;;  %s777_s4 = inlined_call_operand.vmem [shape: bf16[2,2,8,16], index: 4, kind: output, shape index: {}]  }
   0x1   :  { %s708_s17 = smov 0   ;;  %s710_s18 = smov 0  }
   0x2   :  { %s712_s19 = smov 0  }
   0x3 LB: > { %s23_s20 = sadd.s32 1, %s667_s17  ;;  %s26_s21 = sadd.s32 1, %s671_s18  ;;  %s675_s19 = sphi %s712_s19, %s14_s19   ;;  %s671_s18 = sphi %s710_s18, %s781_s18   ;;  %s667_s17 = sphi %s708_s17, %s780_s17   ;;  %s663_s16 = sphi %s706_s16, %s779_s16   ;;  %s659_s15 = sphi %s704_s15, %s778_s15  }
   0x4   : > { %p24_p0 = scmp.ge.s32.totalorder %s23_s20, 2  ;;  %p561_p1 = scmp.ge.s32.totalorder %s675_s19, 1 }
   0x5   : > { %p219_p2 = scmp.lt.s32.totalorder %s675_s19, 5 }
   0x6   : > { %s783_s20 = smov (%p24_p0, %s23_s20), 0  ;;  %s785_s21 = smov (!%p24_p0, %s26_s21), %s671_s18 }
   0x7   : > { %p220_p3 = pnand %p561_p1, %p219_p2  ;;  %p28_p4 = scmp.ge.s32.totalorder %s785_s21, 2 }
   0x8   : > { %p270_p5 = scmp.lt.s32.totalorder (!%p220_p3), %s663_s16, 1  ;;  %p272_p6 = scmp.lt.s32.totalorder (!%p220_p3), %s659_s15, 1  ;;  %v677_v0 = vmov (!%p220_p3), 0.0   ;;  %vm678_vm0 = vmmov (!%p220_p3), 0   ;;  %vm315_vm1 = vcmask (!%p220_p3), 130048   ;;  %vm362_vm2 = vcmask (!%p220_p3), 64512  }
   0x9   : > { %s787_s21 = smov (%p28_p4, %s785_s21), 0  ;;  %223 = sbr.rel (%p220_p3) target bundleno = 775 (0x307), region = 36 }
   0xa   : > { %579 = vmatprep.subr.bf16.mxu0 (!%p220_p3), %v677_v0  ;;  %581 = vmatprep.mubr.msk.bf16.mxu0 (!%p220_p3), %vm678_vm0, %v677_v0  ;;  %vm379_vm3 = vcmask (!%p220_p3), 1043456   ;;  %vm424_vm4 = vcmask (!%p220_p3), 125952  }
   0xb   : > { %585 = vmatprep.subr.bf16.mxu1 (!%p220_p3), %v677_v0  ;;  %587 = vmatprep.mubr.msk.bf16.mxu1 (!%p220_p3), %vm678_vm0, %v677_v0 }
  0x10   : > { %s789_s16 = smov (!%p270_p5, %s663_s16), 1  ;;  %s791_s15 = smov (!%p272_p6, %s659_s15), 1 }
  0x11   : > { %s562_s22 = sshll.u32 %s789_s16, 1  ;;  %s296_s7 = scalar_lea.vmem %s776_s3, %s789_s16 }
  0x12   : > { %s275_s23 = sadd.s32 %s562_s22, %s791_s15  ;;  %v570_v4 = vld [vmem:[%s296_s7] ss:$0 sm:$0xff] }
  0x13   : > { %s734_s24 = sshll.u32 %s275_s23, 2 }
  0x14   : > { %s285_s27 = scalar_lea.vmem %s774_s1, %s734_s24  ;;  %s277_s30 = scalar_lea.vmem %s773_s0, %s734_s24 }
  0x15   : > { %v307_v1 = vld [vmem:[%s285_s27] sm:$0xf]  ;;  %s293_s10 = scalar_lea.vmem %s775_s2, %s734_s24  ;;  %s304_s13 = scalar_lea.vmem %s777_s4, %s734_s24 }
  0x16   : > { %v320_v2 = vsel %vm315_vm1, %v307_v1, 0  ;;  %v306_v3 = vld [vmem:[%s277_s30] sm:$0xf] }
  0x17   : > { %580 = vmatpush3.bf16.xpose.msra.mxu0 %v320_v2  ;;  %v375_v16 = vld [vmem:[%s293_s10] sm:$0xf] }
  0x18   : > { %v381_v17 = vsel %vm379_vm3, %v375_v16, 0 }
  0x19   : > { %586 = vmatpush3.bf16.msra.mxu1 %v381_v17 }
  0x1e   : > { %582 = vmatmul.mubr.msk.bf16.vlgmr.msra.gmra.mrb[0].mxu0 %vm315_vm1, %v306_v3 }
  0xf1   : > { %v356_v5 = vpop.f32.mrb[0].mxu0 }
  0xf2   : > { %v357_v6 = vadd.f32 %v570_v4, %v356_v5  ;;  %v583_v7 = vpop.f32.mrb[1].mxu0 }
  0xf3   : > { %v359_v8 = vpop.f32.mrb[2].mxu0 }
  0xf4   : > { %v584_v9 = vpop.f32.mrb[3].mxu0  ;;  %v363_v10 = vsel %vm362_vm2, %v357_v6, -inf }
  0xf5   : > { %364 = vmax.xlane.f32.xlu0 %v363_v10 }
 0x182   : > { %v365_v11 = vpop.xlane.xlu0 %364 }
 0x183   : > { %v366_v12 = vsub.f32 %v357_v6, %v365_v11 }
 0x185   : > { %v367_v13 = vmul.f32 1.442695, %v366_v12 }
 0x187   : > { %633 = vpow2.f32 %v367_v13 }
 0x191   : > { %v634_v14 = vpop.eup %633 }
 0x192   : > { %v369_v15 = vsel %vm362_vm2, %v634_v14, 0.0 }
 0x193   : > { %370 = vadd.xlane.f32.xlu0 %v369_v15 }
 0x220   : > { %v371_v18 = vpop.xlane.xlu0 %370 }
 0x221   : > { %635 = vrcp.f32 %v371_v18 }
 0x22b   : > { %v636_v19 = vpop.eup %635 }
 0x22c   : > { %v373_v20 = vmul.f32 %v636_v19, %v634_v14 }
 0x22e   : > { %v374_v21 = vpack.c.bf16 %v373_v20, %v373_v20 }
 0x230   : > { %588 = vmatmul.mubr.msk.bf16.vlgmr.msra.gmra.mrb[0].mxu1 %vm362_vm2, %v374_v21 }
 0x303   : > { %v417_v22 = vpop.f32.mrb[0].mxu1 }
 0x304   : > { %v423_v23 = vpack.c.bf16 %v417_v22, %v417_v22  ;;  %v589_v24 = vpop.f32.mrb[1].mxu1 }
 0x305   : > { %v420_v25 = vpop.f32.mrb[2].mxu1 }
 0x306   : > { %425 = vst.msk [vmem:[%s304_s13] sm:$0xf] %vm424_vm4, %v423_v23  ;;  %v590_v26 = vpop.f32.mrb[3].mxu1 }
 0x307 PF: > { %s14_s19 = sadd.s32 1, %s675_s19   ;;  %s778_s15 = smov %s667_s17 }
 0x308   : > { %p11_p7 = scmp.ge.s32.totalorder %s14_s19, 6   ;;  %s779_s16 = smov %s671_s18 }
 0x309   : > { %s780_s17 = smov %s783_s20  ;;  %s781_s18 = smov %s787_s21 }
 0x30a   :  { %13 = sbr.rel (!%p11_p7) target bundleno = 3 (0x3), region = 75 }

// kernel: bert_forward.19
= control target key start
LH: loop header
LB: loop body
LE: loop exit
PB: predicated region body
PF: predicated region fallthrough
CT: control target
= control target key end

     0   :  { %v124_v0 = vmov 0.0   ;;  %vm125_vm0 = vmmov 0   ;;  %vm48_vm1 = vcmask 261120   ;;  %s178_s1 = inlined_call_operand.vmem [shape: bf16[32,32], index: 1, kind: input, shape index: {}]   ;;  %s179_s0 = inlined_call_operand.vmem [shape: bf16[16,32], index: 0, kind: input, shape index: {}]   ;;  %s180_s2 = inlined_call_operand.vmem [shape: f32[1,32], index: 2, kind: input, shape index: {}]   ;;  %s181_s3 = inlined_call_operand.vmem [shape: f32[16,32], index: 3, kind: input, shape index: {}]   ;;  %s182_s4 = inlined_call_operand.vmem [shape: f32[16,32], index: 4, kind: output, shape index: {}]  }
   0x1   :  { %111 = vmatprep.subr.bf16.mxu0 %v124_v0  ;;  %v121_v1 = vld [vmem:[%s178_s1] sm:$0xff]   ;;  %115 = vmatprep.mubr.msk.bf16.mxu0 %vm125_vm0, %v124_v0  ;;  %v122_v2 = vld [vmem:[%s178_s1 + $0x8] sm:$0xff]  }
   0x2   :  { %112 = vmatpush3.bf16.msra.mxu0 %v121_v1  ;;  %v123_v3 = vld [vmem:[%s179_s0] sm:$0xff]   ;;  %v94_v10 = vld [vmem:[%s181_s3 + $0x8] sm:$0xff] }
   0x3   :  { %113 = vmatprep.subr.bf16.mxu0 %v124_v0  ;;  %v103_v4 = vld [vmem:[%s180_s2] ss:$0 sm:$0xff] }
   0x4   :  { %v93_v6 = vld [vmem:[%s181_s3] sm:$0xff] }
   0x6   :  { %114 = vmatpush3.bf16.msra.mxu0 %v122_v2 }
   0x9   :  { %116 = vmatmul.mubr.msk.bf16.vlgmr.msra.gmra.mrb[0].mxu0 %vm48_vm1, %v123_v3 }
  0xdc   :  { %v86_v5 = vpop.f32.mrb[0].mxu0 }
  0xdd   :  { %v87_v7 = vadd.f32 %v103_v4, %v86_v5  ;;  %v117_v8 = vpop.f32.mrb[1].mxu0 }
  0xde   :  { %v89_v9 = vpop.f32.mrb[2].mxu0 }
  0xdf   :  { %v95_v11 = vadd.f32 %v93_v6, %v87_v7  ;;  %v90_v12 = vadd.f32 %v103_v4, %v89_v9  ;;  %v118_v13 = vpop.f32.mrb[3].mxu0 }
  0xe1   :  { %97 = vst.msk [vmem:[%s182_s4] sm:$0xff] %vm48_vm1, %v95_v11  ;;  %v96_v14 = vadd.f32 %v94_v10, %v90_v12 }
  0xe3   :  { %98 = vst.msk [vmem:[%s182_s4 + $0x8] sm:$0xff] %vm48_vm1, %v96_v14 }

// kernel: bert_forward.21
= control target key start
LH: loop header
LB: loop body
LE: loop exit
PB: predicated region body
PF: predicated region fallthrough
CT: control target
= control target key end

     0   :  { %v132_v0 = vmov 0.0   ;;  %vm133_vm0 = vmmov 0   ;;  %vm45_vm1 = vcmask 261120   ;;  %vm100_vm2 = vcmask 519168   ;;  %s172_s1 = inlined_call_operand.vmem [shape: bf16[32,64], index: 1, kind: input, shape index: {}]   ;;  %s173_s0 = inlined_call_operand.vmem [shape: bf16[16,32], index: 0, kind: input, shape index: {}]   ;;  %s174_s2 = inlined_call_operand.vmem [shape: f32[1,64], index: 2, kind: input, shape index: {}]   ;;  %s175_s3 = inlined_call_operand.vmem [shape: bf16[16,64], index: 3, kind: output, shape index: {}]  }
   0x1   :  { %119 = vmatprep.subr.bf16.mxu0 %v132_v0  ;;  %v129_v1 = vld [vmem:[%s172_s1] sm:$0xff]   ;;  %123 = vmatprep.mubr.msk.bf16.mxu0 %vm133_vm0, %v132_v0  ;;  %v130_v2 = vld [vmem:[%s172_s1 + $0x8] sm:$0xff]  }
   0x2   :  { %120 = vmatpush3.bf16.msra.mxu0 %v129_v1  ;;  %v131_v3 = vld [vmem:[%s173_s0] sm:$0xff]  }
   0x3   :  { %121 = vmatprep.subr.bf16.mxu0 %v132_v0  ;;  %v107_v4 = vld [vmem:[%s174_s2] ss:$0 sm:$0xff] }
   0x6   :  { %122 = vmatpush3.bf16.msra.mxu0 %v130_v2 }
   0x9   :  { %124 = vmatmul.mubr.msk.bf16.vlgmr.msra.gmra.mrb[0].mxu0 %vm45_vm1, %v131_v3 }
  0xdc   :  { %v83_v5 = vpop.f32.mrb[0].mxu0 }
  0xdd   :  { %v84_v6 = vadd.f32 %v107_v4, %v83_v5  ;;  %v125_v7 = vpop.f32.mrb[1].mxu0 }
  0xde   :  { %v86_v8 = vpop.f32.mrb[2].mxu0 }
  0xdf   :  { %v90_v9 = vmax.f32 %v84_v6, 0.0  ;;  %v87_v10 = vadd.f32 %v107_v4, %v86_v8  ;;  %v126_v11 = vpop.f32.mrb[3].mxu0 }
  0xe1   :  { %v114_v12 = vpack.c.bf16 %v90_v9, %v90_v9  ;;  %v91_v13 = vmax.f32 %v87_v10, 0.0 }
  0xe3   :  { %101 = vst.msk [vmem:[%s175_s3] sm:$0xf] %vm100_vm2, %v114_v12  ;;  %v115_v14 = vpack.c.bf16 %v91_v13, %v91_v13 }
  0xe5   :  { %102 = vst.msk [vmem:[%s175_s3 + $0x4] sm:$0xf] %vm100_vm2, %v115_v14 }

// kernel: bert_forward.22
= control target key start
LH: loop header
LB: loop body
LE: loop exit
PB: predicated region body
PF: predicated region fallthrough
CT: control target
= control target key end

     0   :  { %v151_v0 = vmov 0.0   ;;  %vm152_vm0 = vmmov 0   ;;  %vm64_vm1 = vcmask 523264   ;;  %vm113_vm2 = vcmask 261120   ;;  %s208_s1 = inlined_call_operand.vmem [shape: bf16[64,32], index: 1, kind: input, shape index: {}]   ;;  %s209_s0 = inlined_call_operand.vmem [shape: bf16[16,64], index: 0, kind: input, shape index: {}]   ;;  %s210_s2 = inlined_call_operand.vmem [shape: f32[1,32], index: 2, kind: input, shape index: {}]   ;;  %s211_s3 = inlined_call_operand.vmem [shape: f32[16,32], index: 3, kind: input, shape index: {}]   ;;  %s212_s4 = inlined_call_operand.vmem [shape: f32[16,32], index: 4, kind: output, shape index: {}]  }
   0x1   :  { %132 = vmatprep.subr.bf16.mxu0 %v151_v0  ;;  %v146_v1 = vld [vmem:[%s208_s1] sm:$0xff]   ;;  %140 = vmatprep.mubr.msk.bf16.mxu0 %vm152_vm0, %v151_v0  ;;  %v147_v2 = vld [vmem:[%s208_s1 + $0x8] sm:$0xff]   ;;  %v148_v3 = vld [vmem:[%s208_s1 + $0x10] sm:$0xff]  }
   0x2   :  { %133 = vmatpush3.bf16.msra.mxu0 %v146_v1  ;;  %v149_v4 = vld [vmem:[%s208_s1 + $0x18] sm:$0xff]   ;;  %v150_v5 = vld [vmem:[%s209_s0] sm:$0xff]   ;;  %v110_v12 = vld [vmem:[%s211_s3 + $0x8] sm:$0xff] }
   0x3   :  { %134 = vmatprep.subr.bf16.mxu0 %v151_v0  ;;  %v120_v6 = vld [vmem:[%s210_s2] ss:$0 sm:$0xff] }
   0x4   :  { %v109_v8 = vld [vmem:[%s211_s3] sm:$0xff] }
   0x6   :  { %135 = vmatpush3.bf16.msra.mxu0 %v147_v2 }
   0x7   :  { %136 = vmatprep.subr.bf16.mxu0 %v151_v0 }
   0xa   :  { %137 = vmatpush3.bf16.msra.mxu0 %v148_v3 }
   0xb   :  { %138 = vmatprep.subr.bf16.mxu0 %v151_v0 }
   0xe   :  { %139 = vmatpush3.bf16.msra.mxu0 %v149_v4 }
  0x11   :  { %141 = vmatmul.mubr.msk.bf16.vlgmr.msra.gmra.mrb[0].mxu0 %vm64_vm1, %v150_v5 }
  0xe4   :  { %v102_v7 = vpop.f32.mrb[0].mxu0 }
  0xe5   :  { %v103_v9 = vadd.f32 %v120_v6, %v102_v7  ;;  %v142_v10 = vpop.f32.mrb[1].mxu0 }
  0xe6   :  { %v105_v11 = vpop.f32.mrb[2].mxu0 }
  0xe7   :  { %v111_v13 = vadd.f32 %v109_v8, %v103_v9  ;;  %v106_v14 = vadd.f32 %v120_v6, %v105_v11  ;;  %v143_v15 = vpop.f32.mrb[3].mxu0 }
  0xe9   :  { %114 = vst.msk [vmem:[%s212_s4] sm:$0xff] %vm113_vm2, %v111_v13  ;;  %v112_v16 = vadd.f32 %v110_v12, %v106_v14 }
  0xeb   :  { %115 = vst.msk [vmem:[%s212_s4 + $0x8] sm:$0xff] %vm113_vm2, %v112_v16 }

// kernel: bert_forward.31
= control target key start
LH: loop header
LB: loop body
LE: loop exit
PB: predicated region body
PF: predicated region fallthrough
CT: control target
= control target key end

     0   :  { %v198_v1 = vmov 0.0   ;;  %vm199_vm0 = vmmov 0   ;;  %s247_s0 = inlined_call_operand.vmem [shape: bf16[16,32], index: 0, kind: input, shape index: {}]   ;;  %s248_s1 = inlined_call_operand.vmem [shape: bf16[32,128], index: 1, kind: input, shape index: {}]   ;;  %s249_s2 = inlined_call_operand.vmem [shape: f32[1,128], index: 2, kind: input, shape index: {}]   ;;  %s250_s3 = inlined_call_operand.hbm [shape: f32[16,128], index: 3, kind: output, shape index: {}]  }
   0x1   :  { %v163_v0 = vld [vmem:[%s248_s1] sm:$0xff]   ;;  %150 = vmatprep.subr.bf16.mxu0 %v198_v1  ;;  %v164_v2 = vld [vmem:[%s248_s1 + $0x8] sm:$0xff]   ;;  %154 = vmatprep.mubr.msk.bf16.mxu0 %vm199_vm0, %v198_v1 }
   0x2   :  { %151 = vmatpush3.bf16.msra.mxu0 %v163_v0 }
   0x3   :  { %152 = vmatprep.subr.bf16.mxu0 %v198_v1 }
   0x4   :  { %8 = vsyncpa [#allocation3], 0  ;;  %v165_v3 = vld [vmem:[%s247_s0] sm:$0xff]   ;;  %vm46_vm1 = vcmask 261120   ;;  %s200_s0 = smov [#allocation2]  }
   0x5   :  { %v142_v4 = vld [vmem:[%s249_s2] ss:$0 sm:$0xff]  ;;  %s130_s1 = sshll.u32 %s200_s0, 4  ;;  %s131_s1 = int_to_ptr.vmem [resolvable:$true] %s130_s1 }
   0x6   :  { %153 = vmatpush3.bf16.msra.mxu0 %v164_v2  ;;  %s174_s2 = scalar_lea.vmem %s131_s1, 256  ;;  %p179_p1 = scmp.lt.s32.totalorder %s131_s1, %s131_s1 }
   0x7   :  { %p175_p0 = scmp.ne.s32.totalorder %s131_s1, %s174_s2  ;;  %p180_p2 = scmp.lt.s32.totalorder %s174_s2, %s174_s2 }
   0x9   :  { %155 = vmatmul.mubr.msk.bf16.vlgmr.msra.gmra.mrb[0].mxu0 %vm46_vm1, %v165_v3  ;;  %p181_p3 = por %p180_p2, %p179_p1 }
   0xb   :  { %p182_p4 = pnand %p181_p3, %p175_p0 }
  0xdc   :  { %v84_v5 = vpop.f32.mrb[0].mxu0 }
  0xdd   :  { %v85_v6 = vadd.f32 %v142_v4, %v84_v5  ;;  %v156_v7 = vpop.f32.mrb[1].mxu0 }
  0xde   :  { %v87_v8 = vpop.f32.mrb[2].mxu0 }
  0xdf   :  { %v157_v9 = vpop.f32.mrb[3].mxu0  ;;  %103 = vmax.xlane.f32.xlu0 %v85_v6  ;;  %v88_v10 = vadd.f32 %v142_v4, %v87_v8 }
  0xe3   :  { %105 = vmax.xlane.f32.xlu0 %v88_v10 }
 0x16c   :  { %v104_v11 = vpop.xlane.xlu0 %103 }
 0x16d   :  { %v107_v12 = vsub.f32 %v85_v6, %v104_v11 }
 0x16f   :  { %v109_v13 = vmul.f32 1.442695, %v107_v12 }
 0x170   :  { %v106_v14 = vpop.xlane.xlu0 %105 }
 0x171   :  { %v108_v15 = vsub.f32 %v88_v10, %v106_v14  ;;  %166 = vpow2.f32 %v109_v13 }
 0x173   :  { %v111_v16 = vmul.f32 1.442695, %v108_v15 }
 0x175   :  { %168 = vpow2.f32 %v111_v16 }
 0x17b   :  { %v167_v17 = vpop.eup %166 }
 0x17c   :  { %113 = vadd.xlane.f32.xlu1 %v167_v17 }
 0x17f   :  { %v169_v18 = vpop.eup %168 }
 0x180   :  { %115 = vadd.xlane.f32.xlu1 %v169_v18 }
 0x209   :  { %v114_v19 = vpop.xlane.xlu1 %113 }
 0x20a   :  { %170 = vlog2.f32 %v114_v19 }
 0x20d   :  { %v116_v20 = vpop.xlane.xlu1 %115 }
 0x20e   :  { %172 = vlog2.f32 %v116_v20 }
 0x214   :  { %v171_v21 = vpop.eup %170 }
 0x215   :  { %v118_v22 = vmul.f32 0.6931472, %v171_v21 }
 0x217   :  { %v121_v23 = vsub.f32 %v107_v12, %v118_v22 }
 0x218   :  { %v173_v24 = vpop.eup %172 }
 0x219   :  { %123 = vst [vmem:[#allocation2] sm:$0xff] %v121_v23  ;;  %v120_v25 = vmul.f32 0.6931472, %v173_v24 }
 0x21b   :  { %v122_v26 = vsub.f32 %v108_v15, %v120_v25 }
 0x21d   :  { %124 = vst [vmem:[#allocation2 + $0x8] sm:$0xff] %v122_v26 }
 0x21e   :  { %185 = shalt.err (!%p182_p4)
}
 0x21f   :  { %s186_s22 = scalar_lea.hbm %s250_s3, 256 }
 0x220   :  { %p187_p5 = scmp.ne.s32.totalorder %s250_s3, %s186_s22  ;;  %p190_p6 = scmp.lt.u32.totalorder %s186_s22, %s250_s3 }
 0x222   :  { %p192_p7 = pnand %p190_p6, %p187_p5 }
 0x224   :  { %195 = shalt.err (!%p192_p7)
}
 0x225   :  { %s201_s27 = smov 128   ;;  %s202_s28 = smov 8  }
 0x226   :  { %136 = dma.vmem_to_hbm [thread:$0]  %s131_s1, 256, %s250_s3, [#allocation3], %s201_s27, %s201_s27, %s202_s28  }
 0x227   :  { %196 = dma.done.wait [#allocation3], 256  }
 0x228   :  { %197 = vsyncadd [#allocation3], 4294967040 }
 0x229   :  { %140 = vsyncpa [#allocation3], 1 }

</bundles_post_ra>
